<compile_context>
chip_gen: v5e
topology: v5e:2x2
jax: 0.10.0
libtpu: 0.0.40
codegen_flags: <defaults>
</compile_context>

<pallas_src>
import functools

import jax
import jax.numpy as jnp
from jax.experimental import pallas as pl
from jax.experimental.pallas import tpu as pltpu


def glayer_kernel(x_ref, w_ref, gamma_ref, beta_ref, o_ref, *, matmul_dtype, eps):
    x = x_ref[...]                       # (B, indim) f32
    w = w_ref[...]                       # (outdim_p, indim) f32

    # Linear (bias omitted: it is cancelled exactly by BN mean subtraction).
    # Contract x dim 1 with w dim 1 -> (B, outdim_p); MXU handles the
    # transposed-RHS form natively, f32 accumulation regardless of input dtype.
    y = jax.lax.dot_general(
        x.astype(matmul_dtype), w.astype(matmul_dtype),
        dimension_numbers=(((1,), (1,)), ((), ())),
        preferred_element_type=jnp.float32)

    # BatchNorm1d, training mode (biased batch statistics over the batch axis).
    # Single pass over y: accumulate sum and sum-of-squares together.
    n = y.shape[0]
    inv_n = jnp.float32(1.0 / n)
    s1 = jnp.sum(y, axis=0, keepdims=True)
    s2 = jnp.sum(y * y, axis=0, keepdims=True)
    mean = s1 * inv_n
    var = jnp.maximum(s2 * inv_n - mean * mean, 0.0)   # clamp tiny negative cancellation

    # Fold gamma into the rsqrt scale (EUP slot) and beta/mean into a shift so the
    # per-element work is one multiply + one add.
    scale = gamma_ref[...] * jax.lax.rsqrt(var + eps)  # (1, outdim_p)
    shift = beta_ref[...] - mean * scale               # (1, outdim_p)
    y_bn = y * scale + shift

    # ReLU
    o_ref[...] = jnp.maximum(y_bn, 0.0).astype(o_ref.dtype)


def _round_up(v, m):
    return (v + m - 1) // m * m


def glayer_forward(x, weight, bias, gamma, beta, *, eps=1e-5,
                   matmul_dtype=jnp.float32):
    """Forward of GLayer: Linear -> BatchNorm1d (training mode) -> ReLU.

    x: (B, indim) f32; weight: (outdim, indim); bias/gamma/beta: (outdim,).
    `bias` is accepted for API parity with nn.Linear but is not fed to the
    kernel: a per-feature constant added after the Linear is cancelled exactly
    by BatchNorm's batch-mean subtraction.
    """
    B, indim = x.shape
    outdim = weight.shape[0]
    del bias  # BN-cancelled; keeping it would be dead DMA + VPU work.

    # Lane-dense output: pad the feature dim to a multiple of 128 so the output
    # store is an unmasked vst. Padded columns have zero weight -> y = 0,
    # var = 0, gamma-pad = 1, beta-pad = 0 -> exact zeros (no NaNs), sliced off.
    outdim_p = _round_up(outdim, 128)
    pad = outdim_p - outdim
    if pad:
        weight = jnp.pad(weight, ((0, pad), (0, 0)))
        gamma = jnp.pad(gamma, (0, pad), constant_values=1.0)
        beta = jnp.pad(beta, (0, pad))

    g2 = gamma.reshape(1, outdim_p).astype(jnp.float32)
    be2 = beta.reshape(1, outdim_p).astype(jnp.float32)

    # Small problem: everything fits in VMEM, single kernel invocation (no grid).
    # TODO(synk): for large indim/outdim, add a grid over outdim ("parallel") and
    # K ("arbitrary" with a pl.when-zeroed VMEM accumulator), keeping the full
    # batch in one block so the batch statistics remain correct.
    vmem = pl.BlockSpec(memory_space=pltpu.VMEM)
    kernel = functools.partial(glayer_kernel, matmul_dtype=matmul_dtype, eps=eps)
    out = pl.pallas_call(
        kernel,
        out_shape=jax.ShapeDtypeStruct((B, outdim_p), jnp.float32),
        in_specs=[vmem, vmem, vmem, vmem],
        out_specs=vmem,
    )(x, weight, g2, be2)
    return out[:, :outdim] if pad else out


def glayer_reference(x, weight, bias, gamma, beta, eps=1e-5):
    y = x @ weight.T + bias
    mean = jnp.mean(y, axis=0, keepdims=True)
    var = jnp.mean((y - mean) ** 2, axis=0, keepdims=True)
    y = (y - mean) / jnp.sqrt(var + eps) * gamma + beta
    return jnp.maximum(y, 0.0)


if __name__ == "__main__":
    key = jax.random.PRNGKey(0)
    B, indim, outdim = 8, 32, 64

    kx, kw, kb = jax.random.split(key, 3)
    x = jax.random.normal(kx, (B, indim), dtype=jnp.float32)
    # Deterministic synthetic parameters (PyTorch-like scale for Linear init).
    bound = 1.0 / (indim ** 0.5)
    weight = jax.random.uniform(kw, (outdim, indim), minval=-bound, maxval=bound,
                                dtype=jnp.float32)
    bias = jax.random.uniform(kb, (outdim,), minval=-bound, maxval=bound,
                              dtype=jnp.float32)
    gamma = jnp.ones((outdim,), dtype=jnp.float32)   # BN weight init
    beta = jnp.zeros((outdim,), dtype=jnp.float32)   # BN bias init

    ref = glayer_reference(x, weight, bias, gamma, beta)

    # f32 matmul path: bit-for-bit semantics of the module (bias cancellation is exact).
    out_f32 = jax.block_until_ready(glayer_forward(x, weight, bias, gamma, beta))
    assert out_f32.shape == (B, outdim)
    assert jnp.allclose(out_f32, ref, atol=1e-4, rtol=1e-4), "f32 path mismatch vs reference"

    # bf16 matmul inputs (MXU-rate on v5e/v6e/v7x), f32 accumulation + f32 BN math.
    out_bf16 = jax.block_until_ready(
        glayer_forward(x, weight, bias, gamma, beta, matmul_dtype=jnp.bfloat16))
    assert out_bf16.shape == (B, outdim)
    assert jnp.allclose(out_bf16, ref, atol=5e-2, rtol=5e-2), "bf16 path mismatch vs reference"

    print("KERNEL_OK")
</pallas_src>

<mosaic_0001>
module attributes {stable_mosaic.version = 11 : i64} {
  func.func @glayer_kernel(%arg0: memref<8x32xf32, #tpu.memory_space<vmem>>, %arg1: memref<128x32xf32, #tpu.memory_space<vmem>>, %arg2: memref<1x128xf32, #tpu.memory_space<vmem>>, %arg3: memref<1x128xf32, #tpu.memory_space<vmem>>, %arg4: memref<8x128xf32, #tpu.memory_space<vmem>>) attributes {dimension_semantics = [], scalar_prefetch = 0 : i64, scratch_operands = 0 : i64, tpu.core_type = #tpu.core_type<tc>} {
    %c0 = arith.constant 0 : index
    %c0_0 = arith.constant 0 : index
    %0 = vector.load %arg0[%c0, %c0_0] : memref<8x32xf32, #tpu.memory_space<vmem>>, vector<8x32xf32>
    %c0_1 = arith.constant 0 : index
    %c0_2 = arith.constant 0 : index
    %1 = vector.load %arg1[%c0_1, %c0_2] : memref<128x32xf32, #tpu.memory_space<vmem>>, vector<128x32xf32>
    %cst = arith.constant dense<0.000000e+00> : vector<8x128xf32>
    %2 = tpu.matmul %0, %1, %cst {dimension_numbers = #tpu.dot_dimension_numbers<[1], [1], [0], [0], [0, 0, 1, 0], [], []>} : vector<8x32xf32>, vector<128x32xf32>, vector<8x128xf32> -> vector<8x128xf32>
    %cst_3 = arith.constant dense<0.000000e+00> : vector<128xf32>
    %3 = vector.multi_reduction <add>, %2, %cst_3 [0] : vector<8x128xf32> to vector<128xf32>
    %4 = vector.shape_cast %3 : vector<128xf32> to vector<1x128xf32>
    %5 = arith.mulf %2, %2 : vector<8x128xf32>
    %cst_4 = arith.constant dense<0.000000e+00> : vector<128xf32>
    %6 = vector.multi_reduction <add>, %5, %cst_4 [0] : vector<8x128xf32> to vector<128xf32>
    %7 = vector.shape_cast %6 : vector<128xf32> to vector<1x128xf32>
    %cst_5 = arith.constant 1.250000e-01 : f32
    %8 = vector.broadcast %cst_5 : f32 to vector<1x128xf32>
    %9 = arith.mulf %4, %8 : vector<1x128xf32>
    %cst_6 = arith.constant 1.250000e-01 : f32
    %10 = vector.broadcast %cst_6 : f32 to vector<1x128xf32>
    %11 = arith.mulf %7, %10 : vector<1x128xf32>
    %12 = arith.mulf %9, %9 : vector<1x128xf32>
    %13 = arith.subf %11, %12 : vector<1x128xf32>
    %cst_7 = arith.constant 0.000000e+00 : f32
    %14 = vector.broadcast %cst_7 : f32 to vector<1x128xf32>
    %15 = arith.maximumf %13, %14 : vector<1x128xf32>
    %c0_8 = arith.constant 0 : index
    %c0_9 = arith.constant 0 : index
    %16 = vector.load %arg2[%c0_8, %c0_9] : memref<1x128xf32, #tpu.memory_space<vmem>>, vector<1x128xf32>
    %cst_10 = arith.constant 9.99999974E-6 : f32
    %17 = vector.broadcast %cst_10 : f32 to vector<1x128xf32>
    %18 = arith.addf %15, %17 : vector<1x128xf32>
    %19 = math.rsqrt %18 : vector<1x128xf32>
    %20 = arith.mulf %16, %19 : vector<1x128xf32>
    %c0_11 = arith.constant 0 : index
    %c0_12 = arith.constant 0 : index
    %21 = vector.load %arg3[%c0_11, %c0_12] : memref<1x128xf32, #tpu.memory_space<vmem>>, vector<1x128xf32>
    %22 = arith.mulf %9, %20 : vector<1x128xf32>
    %23 = arith.subf %21, %22 : vector<1x128xf32>
    %24 = vector.broadcast %20 : vector<1x128xf32> to vector<8x128xf32>
    %25 = arith.mulf %2, %24 : vector<8x128xf32>
    %26 = vector.broadcast %23 : vector<1x128xf32> to vector<8x128xf32>
    %27 = arith.addf %25, %26 : vector<8x128xf32>
    %cst_13 = arith.constant 0.000000e+00 : f32
    %28 = vector.broadcast %cst_13 : f32 to vector<8x128xf32>
    %29 = arith.maximumf %27, %28 : vector<8x128xf32>
    %c0_14 = arith.constant 0 : index
    %c0_15 = arith.constant 0 : index
    %30 = vector.load %arg4[%c0_14, %c0_15] : memref<8x128xf32, #tpu.memory_space<vmem>>, vector<8x128xf32>
    tpu.vector_store %arg4[%c0_14, %c0_15], %29 {strides = array<i32>} : memref<8x128xf32, #tpu.memory_space<vmem>>, vector<8x128xf32>,
    return
  }
}

</mosaic_0001>

<bundles_post_ra>
// kernel: tpu_custom_call.1
= control target key start
LH: loop header
LB: loop body
LE: loop exit
PB: predicated region body
PF: predicated region fallthrough
CT: control target
= control target key end

     0   :  { %vm35_vm0 = vcmask 261120   ;;  %s316_s0 = inlined_call_operand.vmem [shape: f32[8,32], index: 0, kind: input, shape index: {}]   ;;  %s317_s1 = inlined_call_operand.vmem [shape: f32[128,32], index: 1, kind: input, shape index: {}]   ;;  %s318_s2 = inlined_call_operand.vmem [shape: f32[1,128], index: 2, kind: input, shape index: {}]   ;;  %s319_s3 = inlined_call_operand.vmem [shape: f32[1,128], index: 3, kind: input, shape index: {}]   ;;  %s320_s4 = inlined_call_operand.hbm [shape: f32[8,128], index: 4, kind: output, shape index: {}]  }
   0x1   :  { %v34_v0 = vld [vmem:[%s317_s1 + $0x78] sm:$0xff]  ;;  %v33_v1 = vld [vmem:[%s317_s1 + $0x70] sm:$0xff] }
   0x2   :  { %167 = vmatpush.xpose.msk.msra.mxu0 %vm35_vm0, %v34_v0 }
   0x3   :  { %9 = vsyncpa [#allocation3], 0  ;;  %v32_v2 = vld [vmem:[%s317_s1 + $0x68] sm:$0xff]  ;;  %v31_v3 = vld [vmem:[%s317_s1 + $0x60] sm:$0xff]  ;;  %s213_s25 = smov [#allocation2]  }
   0x4   :  { %v30_v4 = vld [vmem:[%s317_s1 + $0x58] sm:$0xff]  ;;  %v29_v5 = vld [vmem:[%s317_s1 + $0x50] sm:$0xff]  ;;  %v28_v6 = vld [vmem:[%s317_s1 + $0x48] sm:$0xff]  ;;  %s156_s26 = sshll.u32 %s213_s25, 4  ;;  %s157_s26 = int_to_ptr.vmem [resolvable:$true] %s156_s26 }
   0x5   :  { %v27_v7 = vld [vmem:[%s317_s1 + $0x40] sm:$0xff]  ;;  %v26_v8 = vld [vmem:[%s317_s1 + $0x38] sm:$0xff]  ;;  %v25_v9 = vld [vmem:[%s317_s1 + $0x30] sm:$0xff] }
   0x6   :  { %168 = vmatpush.xpose.msk.msra.mxu0 %vm35_vm0, %v33_v1  ;;  %v24_v10 = vld [vmem:[%s317_s1 + $0x28] sm:$0xff]  ;;  %v23_v11 = vld [vmem:[%s317_s1 + $0x20] sm:$0xff]  ;;  %v22_v12 = vld [vmem:[%s317_s1 + $0x18] sm:$0xff] }
   0x7   :  { %v21_v13 = vld [vmem:[%s317_s1 + $0x10] sm:$0xff]  ;;  %v20_v14 = vld [vmem:[%s317_s1 + $0x8] sm:$0xff]  ;;  %v19_v15 = vld [vmem:[%s317_s1] sm:$0xff] }
   0x8   :  { %v18_v16 = vld [vmem:[%s316_s0] sm:$0xff] }
   0x9   :  { %v125_v42 = vld [vmem:[%s318_s2] sm:$0x1]  ;;  %s158_s2 = sshll.u32 %s320_s4, 4  ;;  %s159_s2 = int_to_ptr.hbm [resolvable:$true] %s158_s2 }
   0xa   :  { %169 = vmatpush.xpose.msk.msra.mxu0 %vm35_vm0, %v32_v2  ;;  %v138_v46 = vld [vmem:[%s319_s3] sm:$0x1] }
   0xe   :  { %170 = vmatpush.xpose.msk.msra.mxu0 %vm35_vm0, %v31_v3 }
  0x12   :  { %171 = vmatpush.xpose.msk.msra.mxu0 %vm35_vm0, %v30_v4 }
  0x16   :  { %172 = vmatpush.xpose.msk.msra.mxu0 %vm35_vm0, %v29_v5 }
  0x1a   :  { %173 = vmatpush.xpose.msk.msra.mxu0 %vm35_vm0, %v28_v6 }
  0x1e   :  { %174 = vmatpush.xpose.msk.msra.mxu0 %vm35_vm0, %v27_v7 }
  0x22   :  { %175 = vmatpush.xpose.msk.msra.mxu0 %vm35_vm0, %v26_v8 }
  0x26   :  { %176 = vmatpush.xpose.msk.msra.mxu0 %vm35_vm0, %v25_v9 }
  0x2a   :  { %177 = vmatpush.xpose.msk.msra.mxu0 %vm35_vm0, %v24_v10 }
  0x2e   :  { %178 = vmatpush.xpose.msk.msra.mxu0 %vm35_vm0, %v23_v11 }
  0x32   :  { %179 = vmatpush.xpose.msk.msra.mxu0 %vm35_vm0, %v22_v12 }
  0x36   :  { %180 = vmatpush.xpose.msk.msra.mxu0 %vm35_vm0, %v21_v13 }
  0x3a   :  { %181 = vmatpush.xpose.msk.msra.mxu0 %vm35_vm0, %v20_v14 }
  0x3e   :  { %182 = vmatpush.xpose.msk.msra.mxu0 %vm35_vm0, %v19_v15 }
  0x41   :  { %183 = vmatmul.msk.f32.vlgmr.msra.gmra.mxu0 %vm35_vm0, %v18_v16 }
  0xbe   :  { %v104_v17 = vpop.f32.mrf.mxu0 }
  0xbf   :  { %v107_v18 = vrot.slane %v104_v17, 4  ;;  %v113_v19 = vmul.f32 %v104_v17, %v104_v17 }
  0xc1   :  { %v108_v20 = vadd.f32 %v107_v18, %v104_v17  ;;  %v114_v21 = vrot.slane %v113_v19, 4 }
  0xc3   :  { %v109_v22 = vrot.slane %v108_v20, 2  ;;  %v115_v23 = vadd.f32 %v114_v21, %v113_v19 }
  0xc5   :  { %v110_v24 = vadd.f32 %v109_v22, %v108_v20  ;;  %v116_v25 = vrot.slane %v115_v23, 2 }
  0xc7   :  { %v111_v26 = vrot.slane %v110_v24, 1  ;;  %v117_v27 = vadd.f32 %v116_v25, %v115_v23 }
  0xc9   :  { %v112_v28 = vadd.f32 %v111_v26, %v110_v24  ;;  %v118_v29 = vrot.slane %v117_v27, 1 }
  0xcb   :  { %v119_v30 = vadd.f32 %v118_v29, %v117_v27  ;;  %v120_v31 = vmul.f32 0.125, %v112_v28 }
  0xcd   :  { %v121_v32 = vmul.f32 0.125, %v119_v30  ;;  %v122_v33 = vmul.f32 %v120_v31, %v120_v31 }
  0xcf   :  { %v123_v34 = vsub.f32 %v121_v32, %v122_v33 }
  0xd1   :  { %v124_v35 = vmax.f32 %v123_v34, 0.0 }
  0xd3   :  { %v126_v36 = vadd.f32 1e-05, %v124_v35 }
  0xd5   :  { %185 = vrsqrt.f32 %v126_v36  ;;  %vm133_vm2 = vweird.f32 %v126_v36 }
  0xdb   :  { %v186_v37 = vpop.eup %185 }
  0xdc   :  { %v128_v38 = vmul.f32 %v186_v37, %v126_v36  ;;  %vm134_vm1 = vweird.f32 %v186_v37 }
  0xdd   :  { %vm135_vm3 = vmor %vm133_vm2, %vm134_vm1 }
  0xde   :  { %v129_v39 = vmul.f32 %v186_v37, %v128_v38 }
  0xe0   :  { %v130_v40 = vmul.f32 0.5, %v129_v39 }
  0xe2   :  { %v131_v41 = vsub.f32 1.5, %v130_v40 }
  0xe4   :  { %v132_v43 = vmul.f32 %v186_v37, %v131_v41 }
  0xe6   :  { %v136_v44 = vsel %vm135_vm3, %v186_v37, %v132_v43 }
  0xe7   :  { %v137_v45 = vmul.f32 %v136_v44, %v125_v42 }
  0xe9   :  { %v142_v47 = vperm.slane %v137_v45, 0  ;;  %v139_v48 = vmul.f32 %v137_v45, %v120_v31 }
  0xeb   :  { %v140_v49 = vsub.f32 %v138_v46, %v139_v48  ;;  %v144_v50 = vmul.f32 %v142_v47, %v104_v17 }
  0xed   :  { %v146_v51 = vperm.slane %v140_v49, 0 }
  0xef   :  { %v148_v52 = vadd.f32 %v146_v51, %v144_v50 }
  0xf1   :  { %v149_v53 = vmax.f32 %v148_v52, 0.0 }
  0xf3   :  { %150 = vst [vmem:[#allocation2] sm:$0xff] %v149_v53 }
  0xf4   :  { %161 = dma.vmem_to_hbm [thread:$0]  %s157_s26, 128, %s159_s2, [#allocation3]  }
  0xf5   :  { %211 = dma.done.wait [#allocation3], 128  }
  0xf6   :  { %212 = vsyncadd [#allocation3], 4294967168 }
  0xf7   :  { %166 = vsyncpa [#allocation3], 1 }

</bundles_post_ra>
